<compile_context>
chip_gen: v7x
topology: tpu7x:2x2x1
jax: 0.10.0
libtpu: 0.0.40
codegen_flags: <defaults>
</compile_context>

<pallas_src>
import functools

import jax
import jax.numpy as jnp
from jax.experimental import pallas as pl
from jax.experimental.pallas import tpu as pltpu


def _round_up(x, m):
    return ((x + m - 1) // m) * m


def _brelu(x, q):
    # TODO(synk): BReLU_Net's exact activation (its q / mean / var parameterization) is
    # not provided in the module source; a bounded ReLU clamp(x, 0, q) is the stand-in.
    return jnp.clip(x, 0.0, q)


def policy_kernel(x_ref, w1_ref, b1_ref, w2_ref, b2_ref, w3_ref, b3_ref, out_ref, *, q):
    x = x_ref[...]                                                       # (bb, n_state)
    h1 = _brelu(jnp.dot(x, w1_ref[...], preferred_element_type=jnp.float32) + b1_ref[...], q)
    h2 = _brelu(jnp.dot(h1, w2_ref[...], preferred_element_type=jnp.float32) + b2_ref[...], q)
    logits = jnp.dot(h2, w3_ref[...], preferred_element_type=jnp.float32) + b3_ref[...]
    # softmax over the action axis (PyTorch dim=1), numerically stable.
    m = jnp.max(logits, axis=-1, keepdims=True)
    e = jnp.exp(logits - m)
    denom = jnp.sum(e, axis=-1, keepdims=True)
    out_ref[...] = e * pl.reciprocal(denom, approx=False)


def policy_net_forward(x, params, *, q=1.0, max_block_b=512):
    B, n_state = x.shape
    n_h1 = params["w1"].shape[1]
    n_h2 = params["w2"].shape[1]
    n_action = params["w3"].shape[1]

    # Batch block: multiple of 8 sublanes, capped at max_block_b (itself a multiple of 8).
    bb = min(_round_up(B, 8), max_block_b)
    B_pad = _round_up(B, bb)
    grid_b = B_pad // bb

    x_in = x if B_pad == B else jnp.pad(x, ((0, B_pad - B), (0, 0)))

    out = pl.pallas_call(
        functools.partial(policy_kernel, q=q),
        grid=(grid_b,),
        in_specs=[
            pl.BlockSpec((bb, n_state), lambda i: (i, 0)),
            pl.BlockSpec((n_state, n_h1), lambda i: (0, 0)),
            pl.BlockSpec((1, n_h1), lambda i: (0, 0)),
            pl.BlockSpec((n_h1, n_h2), lambda i: (0, 0)),
            pl.BlockSpec((1, n_h2), lambda i: (0, 0)),
            pl.BlockSpec((n_h2, n_action), lambda i: (0, 0)),
            pl.BlockSpec((1, n_action), lambda i: (0, 0)),
        ],
        out_specs=pl.BlockSpec((bb, n_action), lambda i: (i, 0)),
        out_shape=jax.ShapeDtypeStruct((B_pad, n_action), jnp.float32),
        compiler_params=pltpu.CompilerParams(
            # Only shard across cores when there is actually more than one batch block.
            dimension_semantics=("parallel",) if grid_b > 1 else ("arbitrary",)),
    )(x_in, params["w1"], params["b1"], params["w2"], params["b2"],
      params["w3"], params["b3"])

    if B_pad != B:
        out = out[:B]

    # BReLU_Net returns its layer weights alongside the output; weights here are stored
    # pre-transposed as (in, out) relative to nn.Linear's (out, in) layout.
    return out, params["w1"], params["w2"], params["w3"]


def init_params(key, n_state, n_action, mean=0.0, var=1.0):
    n_h1 = n_h2 = 10  # BReLU_Net(n_state, 10, 10, n_action, q, mean, var)
    ks = jax.random.split(key, 6)

    def w(k, shape, scale=0.1):
        return (mean + scale * jnp.sqrt(var) * jax.random.normal(k, shape)).astype(jnp.float32)

    return dict(
        w1=w(ks[0], (n_state, n_h1)), b1=w(ks[1], (1, n_h1)),
        w2=w(ks[2], (n_h1, n_h2)),    b2=w(ks[3], (1, n_h2)),
        w3=w(ks[4], (n_h2, n_action)), b3=w(ks[5], (1, n_action)),
    )


if __name__ == "__main__":
    # Small, module-consistent shapes: batch=8, n_state=8, hidden=10/10, n_action=4.
    B, n_state, n_action = 8, 8, 4
    q = 1.0
    key = jax.random.PRNGKey(0)
    pk, xk = jax.random.split(key)
    params = init_params(pk, n_state, n_action)
    x = jax.random.normal(xk, (B, n_state), dtype=jnp.float32)

    out, w1, w2, w3 = policy_net_forward(x, params, q=q)
    jax.block_until_ready((out, w1, w2, w3))

    assert out.shape == (B, n_action)
    assert w1.shape == (n_state, 10) and w2.shape == (10, 10) and w3.shape == (10, n_action)
    row_sums = jnp.sum(out, axis=1)
    assert bool(jnp.all(jnp.abs(row_sums - 1.0) < 1e-4))
    assert bool(jnp.all(out >= 0.0))
    print("KERNEL_OK")
</pallas_src>

<mosaic_0001>
module attributes {stable_mosaic.version = 11 : i64} {
  func.func @policy_kernel(%arg0: i32, %arg1: memref<8x8xf32, #tpu.memory_space<vmem>>, %arg2: memref<8x10xf32, #tpu.memory_space<vmem>>, %arg3: memref<1x10xf32, #tpu.memory_space<vmem>>, %arg4: memref<10x10xf32, #tpu.memory_space<vmem>>, %arg5: memref<1x10xf32, #tpu.memory_space<vmem>>, %arg6: memref<10x4xf32, #tpu.memory_space<vmem>>, %arg7: memref<1x4xf32, #tpu.memory_space<vmem>>, %arg8: memref<8x4xf32, #tpu.memory_space<vmem>>) attributes {dimension_semantics = [#tpu.dimension_semantics<arbitrary>], iteration_bounds = array<i64: 1>, scalar_prefetch = 0 : i64, scratch_operands = 0 : i64, tpu.core_type = #tpu.core_type<tc>, window_params = [{transform_indices = @transform_0, window_bounds = array<i64: 8, 8>}, {pipeline_mode = #tpu.pipeline_mode<synchronous>, transform_indices = @transform_1, window_bounds = array<i64: 8, 10>}, {pipeline_mode = #tpu.pipeline_mode<synchronous>, transform_indices = @transform_2, window_bounds = array<i64: 1, 10>}, {pipeline_mode = #tpu.pipeline_mode<synchronous>, transform_indices = @transform_3, window_bounds = array<i64: 10, 10>}, {pipeline_mode = #tpu.pipeline_mode<synchronous>, transform_indices = @transform_4, window_bounds = array<i64: 1, 10>}, {pipeline_mode = #tpu.pipeline_mode<synchronous>, transform_indices = @transform_5, window_bounds = array<i64: 10, 4>}, {pipeline_mode = #tpu.pipeline_mode<synchronous>, transform_indices = @transform_6, window_bounds = array<i64: 1, 4>}, {transform_indices = @transform_7, window_bounds = array<i64: 8, 4>}]} {
    %c0 = arith.constant 0 : index
    %c0_0 = arith.constant 0 : index
    %0 = vector.load %arg1[%c0, %c0_0] : memref<8x8xf32, #tpu.memory_space<vmem>>, vector<8x8xf32>
    %c0_1 = arith.constant 0 : index
    %c0_2 = arith.constant 0 : index
    %1 = vector.load %arg2[%c0_1, %c0_2] : memref<8x10xf32, #tpu.memory_space<vmem>>, vector<8x10xf32>
    %cst = arith.constant dense<0.000000e+00> : vector<8x10xf32>
    %2 = tpu.matmul %0, %1, %cst {dimension_numbers = #tpu.dot_dimension_numbers<[1], [0], [0], [1], [0, 0, 1, 1], [], []>} : vector<8x8xf32>, vector<8x10xf32>, vector<8x10xf32> -> vector<8x10xf32>
    %c0_3 = arith.constant 0 : index
    %c0_4 = arith.constant 0 : index
    %3 = vector.load %arg3[%c0_3, %c0_4] : memref<1x10xf32, #tpu.memory_space<vmem>>, vector<1x10xf32>
    %4 = vector.broadcast %3 : vector<1x10xf32> to vector<8x10xf32>
    %5 = arith.addf %2, %4 : vector<8x10xf32>
    %cst_5 = arith.constant 0.000000e+00 : f32
    %cst_6 = arith.constant 1.000000e+00 : f32
    %6 = vector.broadcast %cst_5 : f32 to vector<8x10xf32>
    %7 = arith.maximumf %6, %5 : vector<8x10xf32>
    %8 = vector.broadcast %cst_6 : f32 to vector<8x10xf32>
    %9 = arith.minimumf %8, %7 : vector<8x10xf32>
    %c0_7 = arith.constant 0 : index
    %c0_8 = arith.constant 0 : index
    %10 = vector.load %arg4[%c0_7, %c0_8] : memref<10x10xf32, #tpu.memory_space<vmem>>, vector<10x10xf32>
    %cst_9 = arith.constant dense<0.000000e+00> : vector<8x10xf32>
    %11 = tpu.matmul %9, %10, %cst_9 {dimension_numbers = #tpu.dot_dimension_numbers<[1], [0], [0], [1], [0, 0, 1, 1], [], []>} : vector<8x10xf32>, vector<10x10xf32>, vector<8x10xf32> -> vector<8x10xf32>
    %c0_10 = arith.constant 0 : index
    %c0_11 = arith.constant 0 : index
    %12 = vector.load %arg5[%c0_10, %c0_11] : memref<1x10xf32, #tpu.memory_space<vmem>>, vector<1x10xf32>
    %13 = vector.broadcast %12 : vector<1x10xf32> to vector<8x10xf32>
    %14 = arith.addf %11, %13 : vector<8x10xf32>
    %cst_12 = arith.constant 0.000000e+00 : f32
    %cst_13 = arith.constant 1.000000e+00 : f32
    %15 = vector.broadcast %cst_12 : f32 to vector<8x10xf32>
    %16 = arith.maximumf %15, %14 : vector<8x10xf32>
    %17 = vector.broadcast %cst_13 : f32 to vector<8x10xf32>
    %18 = arith.minimumf %17, %16 : vector<8x10xf32>
    %c0_14 = arith.constant 0 : index
    %c0_15 = arith.constant 0 : index
    %19 = vector.load %arg6[%c0_14, %c0_15] : memref<10x4xf32, #tpu.memory_space<vmem>>, vector<10x4xf32>
    %cst_16 = arith.constant dense<0.000000e+00> : vector<8x4xf32>
    %20 = tpu.matmul %18, %19, %cst_16 {dimension_numbers = #tpu.dot_dimension_numbers<[1], [0], [0], [1], [0, 0, 1, 1], [], []>} : vector<8x10xf32>, vector<10x4xf32>, vector<8x4xf32> -> vector<8x4xf32>
    %c0_17 = arith.constant 0 : index
    %c0_18 = arith.constant 0 : index
    %21 = vector.load %arg7[%c0_17, %c0_18] : memref<1x4xf32, #tpu.memory_space<vmem>>, vector<1x4xf32>
    %22 = vector.broadcast %21 : vector<1x4xf32> to vector<8x4xf32>
    %23 = arith.addf %20, %22 : vector<8x4xf32>
    %cst_19 = arith.constant dense<0xFF800000> : vector<8xf32>
    %24 = vector.multi_reduction <maximumf>, %23, %cst_19 [1] : vector<8x4xf32> to vector<8xf32>
    %25 = vector.shape_cast %24 : vector<8xf32> to vector<8x1xf32>
    %26 = vector.broadcast %25 : vector<8x1xf32> to vector<8x4xf32>
    %27 = arith.subf %23, %26 : vector<8x4xf32>
    %28 = math.exp %27 : vector<8x4xf32>
    %cst_20 = arith.constant dense<0.000000e+00> : vector<8xf32>
    %29 = vector.multi_reduction <add>, %28, %cst_20 [1] : vector<8x4xf32> to vector<8xf32>
    %30 = vector.shape_cast %29 : vector<8xf32> to vector<8x1xf32>
    %31 = tpu.reciprocal %30 : vector<8x1xf32> -> vector<8x1xf32>
    %32 = vector.broadcast %31 : vector<8x1xf32> to vector<8x4xf32>
    %33 = arith.mulf %28, %32 : vector<8x4xf32>
    %c0_21 = arith.constant 0 : index
    %c0_22 = arith.constant 0 : index
    %34 = vector.load %arg8[%c0_21, %c0_22] : memref<8x4xf32, #tpu.memory_space<vmem>>, vector<8x4xf32>
    tpu.vector_store %arg8[%c0_21, %c0_22], %33 {strides = array<i32>} : memref<8x4xf32, #tpu.memory_space<vmem>>, vector<8x4xf32>,
    return
  }
  func.func @transform_0(%arg0: i32) -> (i32, i32) {
    %c0_i32 = arith.constant 0 : i32
    %c0_i32_0 = arith.constant 0 : i32
    return %arg0, %c0_i32 : i32, i32
  }
  func.func @transform_1(%arg0: i32) -> (i32, i32) {
    %c0_i32 = arith.constant 0 : i32
    %c0_i32_0 = arith.constant 0 : i32
    %c0_i32_1 = arith.constant 0 : i32
    return %c0_i32, %c0_i32_0 : i32, i32
  }
  func.func @transform_2(%arg0: i32) -> (i32, i32) {
    %c0_i32 = arith.constant 0 : i32
    %c0_i32_0 = arith.constant 0 : i32
    %c0_i32_1 = arith.constant 0 : i32
    return %c0_i32, %c0_i32_0 : i32, i32
  }
  func.func @transform_3(%arg0: i32) -> (i32, i32) {
    %c0_i32 = arith.constant 0 : i32
    %c0_i32_0 = arith.constant 0 : i32
    %c0_i32_1 = arith.constant 0 : i32
    return %c0_i32, %c0_i32_0 : i32, i32
  }
  func.func @transform_4(%arg0: i32) -> (i32, i32) {
    %c0_i32 = arith.constant 0 : i32
    %c0_i32_0 = arith.constant 0 : i32
    %c0_i32_1 = arith.constant 0 : i32
    return %c0_i32, %c0_i32_0 : i32, i32
  }
  func.func @transform_5(%arg0: i32) -> (i32, i32) {
    %c0_i32 = arith.constant 0 : i32
    %c0_i32_0 = arith.constant 0 : i32
    %c0_i32_1 = arith.constant 0 : i32
    return %c0_i32, %c0_i32_0 : i32, i32
  }
  func.func @transform_6(%arg0: i32) -> (i32, i32) {
    %c0_i32 = arith.constant 0 : i32
    %c0_i32_0 = arith.constant 0 : i32
    %c0_i32_1 = arith.constant 0 : i32
    return %c0_i32, %c0_i32_0 : i32, i32
  }
  func.func @transform_7(%arg0: i32) -> (i32, i32) {
    %c0_i32 = arith.constant 0 : i32
    %c0_i32_0 = arith.constant 0 : i32
    return %arg0, %c0_i32 : i32, i32
  }
}

</mosaic_0001>

<bundles_post_ra>
// kernel: tpu_custom_call.1
= control target key start
LH: loop header
LB: loop body
LE: loop exit
PB: predicated region body
PF: predicated region fallthrough
CT: control target
= control target key end

     0   :  { %12 = vsyncpa [#allocation3], 0  ;;  %s391_s24 = smov [#allocation2]   ;;  %s478_s0 = inlined_call_operand.vmem [shape: f32[8,8], index: 0, kind: input, shape index: {}]   ;;  %s479_s1 = inlined_call_operand.hbm [shape: f32[8,10], index: 1, kind: input, shape index: {}]   ;;  %s480_s2 = inlined_call_operand.vmem [shape: f32[1,10], index: 2, kind: input, shape index: {}]   ;;  %s481_s3 = inlined_call_operand.vmem [shape: f32[10,10], index: 3, kind: input, shape index: {}]   ;;  %s482_s4 = inlined_call_operand.vmem [shape: f32[1,10], index: 4, kind: input, shape index: {}]   ;;  %s483_s5 = inlined_call_operand.vmem [shape: f32[10,4], index: 5, kind: input, shape index: {}]   ;;  %s484_s6 = inlined_call_operand.vmem [shape: f32[1,4], index: 6, kind: input, shape index: {}]   ;;  %s485_s7 = inlined_call_operand.vmem [shape: f32[8,4], index: 7, kind: output, shape index: {}]  }
   0x1   :  { %s21_s25 = sshll.u32 %s391_s24, 4  ;;  %s367_s28 = scalar_lea.hbm %s479_s1, 128  ;;  %s22_s25 = int_to_ptr.vmem [resolvable:$true] %s21_s25 }
   0x2   :  { %p368_p0 = scmp.ne.s32.totalorder %s479_s1, %s367_s28  ;;  %p371_p1 = scmp.lt.u32.totalorder %s367_s28, %s479_s1 }
   0x4   :  { %p373_p2 = pnand %p371_p1, %p368_p0 }
   0x6   :  { %376 = shalt.err (!%p373_p2)
}
   0x7   :  { %s377_s10 = scalar_lea.vmem %s22_s25, 128  ;;  %p382_p4 = scmp.lt.s32.totalorder %s22_s25, %s22_s25 }
   0x8   :  { %p378_p3 = scmp.ne.s32.totalorder %s22_s25, %s377_s10  ;;  %p383_p5 = scmp.lt.s32.totalorder %s377_s10, %s377_s10 }
   0xa   :  { %p384_p6 = por %p383_p5, %p382_p4 }
   0xc   :  { %p385_p7 = pnand %p384_p6, %p378_p3 }
   0xe   :  { %388 = shalt.err (!%p385_p7)
}
   0xf   :  { %24 = dma.hbm_to_vmem [thread:$0]  %s479_s1, 128, %s22_s25, [#allocation3]  }
  0x10   :  { %389 = dma.done.wait [#allocation3], 128  }
  0x11   :  { %390 = vsyncadd [#allocation3], 4294967168  ;;  %v392_v0 = vmov 0.0   ;;  %vm393_vm0 = vmmov 0   ;;  %vm47_vm1 = vcmask 64512   ;;  %v39_v1 = vld [vmem:[#allocation2] sm:$0xff] }
  0x12   :  { %331 = vmatprep.subr.mxu0 %v392_v0  ;;  %333 = vmatprep.mubr.msk.f32.mxu0 %vm393_vm0, %v392_v0  ;;  %v38_v2 = vld [vmem:[%s478_s0] sm:$0xff]  ;;  %v124_v4 = vld [vmem:[%s481_s3 + $0x8] sm:$0x3]  ;;  %vm136_vm2 = vcmask 1041408   ;;  %v394_v6 = vmov 0.0|0.0   ;;  %vm395_vm3 = vmmov 1  }
  0x13   :  { %340 = vmatprep.mubr.msk.f32.mxu1 %vm393_vm0, %v392_v0  ;;  %332 = vmatpush3.msra.mxu0 %v39_v1  ;;  %v123_v3 = vld [vmem:[%s481_s3] sm:$0xff]  ;;  %vm352_vm4 = vmpackc.low %vm136_vm2, %vm395_vm3  ;;  %vm132_vm5 = vcmask 80896   ;;  %v213_v14 = vld [vmem:[%s483_s5 + $0x8] sm:$0x3]  ;;  %vm297_vm6 = vcmask 31744  }
  0x14   :  { %334 = vmatmul.mubr.msk.f32.vlgmr.msra.gmra.mrb[0].mxu0 %vm47_vm1, %v38_v2  ;;  %v351_v5 = vpack.c.bf16 %v124_v4, %v123_v3  ;;  %350 = vmatprep.subr.bf16.mxu1 %v394_v6  ;;  %v315_v7 = vld [vmem:[%s480_s2] ss:$0 sm:$0xff] }
  0x15   :  { %347 = vmatprep.mubr.msk.f32.mxu0 %vm393_vm0, %v392_v0  ;;  %354 = vmatprep.subr.bf16.mxu0 %v394_v6  ;;  %v212_v13 = vld [vmem:[%s483_s5] sm:$0xff] }
  0x16   :  { %353 = vmatpush3.bf16.msk.msra.mxu1 %vm352_vm4, %v351_v5  ;;  %v355_v15 = vpack.c.bf16 %v213_v14, %v212_v13  ;;  %v317_v16 = vld [vmem:[%s482_s4] ss:$0 sm:$0xff] }
  0x17   :  { %v320_v22 = vld [vmem:[%s484_s6] ss:$0 sm:$0xff] }
  0x18   :  { %357 = vmatpush3.bf16.msk.msra.mxu0 %vm352_vm4, %v355_v15 }
  0xe7   :  { %v117_v8 = vpop.f32.mrb[0].mxu0 }
  0xe8   :  { %v118_v9 = vadd.f32 %v315_v7, %v117_v8  ;;  %v335_v10 = vpop.f32.mrb[1].mxu0 }
  0xea   :  { %v121_v11 = vmax.f32 %v118_v9, 0.0 }
  0xec   :  { %v122_v12 = vmin.f32 %v121_v11, 1.0 }
  0xee   :  { %341 = vmatmul.mubr.msk.f32.vlgmr.msra.gmra.mrb[0].mxu1 %vm132_vm5, %v122_v12 }
 0x1c1   :  { %v206_v17 = vpop.f32.mrb[0].mxu1 }
 0x1c2   :  { %v207_v18 = vadd.f32 %v317_v16, %v206_v17  ;;  %v342_v19 = vpop.f32.mrb[1].mxu1 }
 0x1c4   :  { %v210_v20 = vmax.f32 %v207_v18, 0.0 }
 0x1c6   :  { %v211_v21 = vmin.f32 %v210_v20, 1.0 }
 0x1c8   :  { %348 = vmatmul.mubr.msk.f32.vlgmr.msra.gmra.mrb[2].mxu0 %vm132_vm5, %v211_v21 }
 0x29b   :  { %v293_v23 = vpop.f32.mrb[2].mxu0 }
 0x29c   :  { %v294_v24 = vadd.f32 %v320_v22, %v293_v23  ;;  %v349_v25 = vpop.f32.mrb[3].mxu0 }
 0x29e   :  { %v298_v26 = vsel %vm297_vm6, %v294_v24, -inf }
 0x29f   :  { %299 = vmax.xlane.f32.xlu0 %v298_v26 }
 0x32c   :  { %v300_v27 = vpop.xlane.xlu0 %299 }
 0x32d   :  { %v301_v28 = vsub.f32 %v294_v24, %v300_v27 }
 0x32f   :  { %v302_v29 = vmul.f32 1.442695, %v301_v28 }
 0x331   :  { %363 = vpow2.f32 %v302_v29 }
 0x33b   :  { %v364_v30 = vpop.eup %363 }
 0x33c   :  { %v304_v31 = vsel %vm297_vm6, %v364_v30, 0.0 }
 0x33d   :  { %305 = vadd.xlane.f32.xlu0 %v304_v31 }
 0x3ca   :  { %v306_v32 = vpop.xlane.xlu0 %305 }
 0x3cb   :  { %365 = vrcp.f32 %v306_v32 }
 0x3d5   :  { %v366_v33 = vpop.eup %365 }
 0x3d6   :  { %v308_v34 = vmul.f32 %v366_v33, %v364_v30 }
 0x3d8   :  { %309 = vst.msk [vmem:[%s485_s7] sm:$0xff] %vm297_vm6, %v308_v34 }
 0x3d9   :  { %314 = vsyncpa [#allocation3], 1 }

</bundles_post_ra>
